<compile_context>
chip_gen: v5e
topology: v5e:2x2
jax: 0.10.0
libtpu: 0.0.40
codegen_flags: <defaults>
</compile_context>

<pallas_src>
import functools

import jax
import jax.numpy as jnp
from jax.experimental import pallas as pl
from jax.experimental.pallas import tpu as pltpu

HIDDEN = 100     # logical hidden width (matches the PyTorch module)
HPAD = 128       # padded hidden width (one full lane tile)
TB_MAX = 2048    # batch-tile width (lanes) per grid step; amortizes ~0.35us/step


def mlp_kernel(x_ref, w1_ref, b1_ref, w2_ref, b2_ref, w3_ref, b3_ref, o_ref):
    x = x_ref[...]                                             # (1, TB), lane-dense
    # fc1 + ReLU: contraction dim is 1 -> plain VPU broadcast multiply, no MXU.
    h1 = jnp.maximum(w1_ref[...] * x + b1_ref[...], 0.0)       # (HPAD, TB)
    # fc2 + ReLU: the only real matmul, (128,128) @ (128,TB), fully MXU-aligned.
    h2 = jnp.dot(w2_ref[...], h1, preferred_element_type=jnp.float32)
    h2 = jnp.maximum(h2 + b2_ref[...], 0.0)                    # (HPAD, TB)
    # fc3: output dim is 1 -> VPU multiply + sublane reduction; result stays lane-dense.
    o = jnp.sum(h2 * w3_ref[...], axis=0, keepdims=True)       # (1, TB)
    o_ref[...] = (o + b3_ref[0]).astype(o_ref.dtype)           # b3 is a scalar in SMEM


def _round_up(n, m):
    return ((n + m - 1) // m) * m


@functools.partial(jax.jit, static_argnames=("tb_max",))
def simple_nn_forward(x, params, *, tb_max=TB_MAX):
    """x: (B, 1) float32. params: padded kernel-layout params from pack_params."""
    w1, b1, w2, b2, w3, b3 = (params["w1"], params["b1"], params["w2"],
                              params["b2"], params["w3"], params["b3"])
    B = x.shape[0]
    H = w2.shape[0]  # HPAD

    # Batch goes on the lane axis: pad to full 128-lane tiles and split into
    # TB-wide tiles over a 1-D grid. Padded columns are zero and sliced off.
    b_pad = max(_round_up(B, 128), 128)
    tb = min(tb_max, b_pad)
    b_pad = _round_up(b_pad, tb)
    grid = (b_pad // tb,)

    x_t = jnp.zeros((1, b_pad), jnp.float32).at[0, :B].set(x[:, 0])

    out_t = pl.pallas_call(
        mlp_kernel,
        out_shape=jax.ShapeDtypeStruct((1, b_pad), jnp.float32),
        grid=grid,
        in_specs=[
            pl.BlockSpec((1, tb), lambda i: (0, i)),           # x tile, lane-dense
            pl.BlockSpec((H, 1), lambda i: (0, 0)),            # w1 column (VMEM-resident)
            pl.BlockSpec((H, 1), lambda i: (0, 0)),            # b1 column
            pl.BlockSpec((H, H), lambda i: (0, 0)),            # w2 (out,in), padded 128x128
            pl.BlockSpec((H, 1), lambda i: (0, 0)),            # b2 column
            pl.BlockSpec((H, 1), lambda i: (0, 0)),            # w3 column
            pl.BlockSpec(memory_space=pltpu.MemorySpace.SMEM), # b3 scalar
        ],
        out_specs=pl.BlockSpec((1, tb), lambda i: (0, i)),     # lane-dense output
        compiler_params=pltpu.CompilerParams(
            # Batch tiles are independent: lets v7x shard grid steps across its
            # two TensorCores; harmless on v5e/v6e.
            dimension_semantics=("parallel",),
        ),
    )(x_t, w1, b1, w2, b2, w3, b3)

    return out_t[0, :B].reshape(B, 1)


def init_params(key):
    """Deterministic init mimicking PyTorch nn.Linear defaults:
    U(-1/sqrt(fan_in), 1/sqrt(fan_in)); weights in torch's (out, in) layout."""
    def linear(k, fan_in, fan_out):
        kw, kb = jax.random.split(k)
        bound = 1.0 / float(fan_in) ** 0.5
        w = jax.random.uniform(kw, (fan_out, fan_in), jnp.float32, -bound, bound)
        b = jax.random.uniform(kb, (fan_out,), jnp.float32, -bound, bound)
        return w, b

    k1, k2, k3 = jax.random.split(key, 3)
    w1, b1 = linear(k1, 1, HIDDEN)
    w2, b2 = linear(k2, HIDDEN, HIDDEN)
    w3, b3 = linear(k3, HIDDEN, 1)
    return {"w1": w1, "b1": b1, "w2": w2, "b2": b2, "w3": w3, "b3": b3}


def pack_params(p, hpad=HPAD):
    """Zero-pad hidden 100 -> 128 and lay weights out for the transposed kernel.
    Padded entries are exactly zero so they contribute nothing."""
    h = p["w2"].shape[0]
    w1 = jnp.zeros((hpad, 1), jnp.float32).at[:h, :].set(p["w1"])
    b1 = jnp.zeros((hpad, 1), jnp.float32).at[:h, 0].set(p["b1"])
    w2 = jnp.zeros((hpad, hpad), jnp.float32).at[:h, :h].set(p["w2"])
    b2 = jnp.zeros((hpad, 1), jnp.float32).at[:h, 0].set(p["b2"])
    w3 = jnp.zeros((hpad, 1), jnp.float32).at[:h, 0].set(p["w3"][0, :])
    b3 = p["b3"].reshape(1).astype(jnp.float32)
    return {"w1": w1, "b1": b1, "w2": w2, "b2": b2, "w3": w3, "b3": b3}


def reference_forward(x, p):
    """Pure-JAX reference using the unpadded torch-layout params."""
    h1 = jnp.maximum(x @ p["w1"].T + p["b1"], 0.0)
    h2 = jnp.maximum(h1 @ p["w2"].T + p["b2"], 0.0)
    return h2 @ p["w3"].T + p["b3"]


if __name__ == "__main__":
    key = jax.random.PRNGKey(0)
    pkey, xkey = jax.random.split(key)
    torch_params = init_params(pkey)
    kernel_params = pack_params(torch_params)

    B = 8  # small batch; input feature dim is 1 per the module's fc1
    x = jax.random.normal(xkey, (B, 1), dtype=jnp.float32)

    y = simple_nn_forward(x, kernel_params)
    y = jax.block_until_ready(y)

    y_ref = reference_forward(x, torch_params)
    assert y.shape == (B, 1)
    assert jnp.allclose(y, y_ref, atol=1e-5, rtol=1e-5), float(jnp.max(jnp.abs(y - y_ref)))

    print("KERNEL_OK")
</pallas_src>

<mosaic_0001>
module attributes {stable_mosaic.version = 11 : i64} {
  func.func @mlp_kernel(%arg0: i32, %arg1: memref<1x128xf32, #tpu.memory_space<vmem>>, %arg2: memref<128x1xf32, #tpu.memory_space<vmem>>, %arg3: memref<128x1xf32, #tpu.memory_space<vmem>>, %arg4: memref<128x128xf32, #tpu.memory_space<vmem>>, %arg5: memref<128x1xf32, #tpu.memory_space<vmem>>, %arg6: memref<128x1xf32, #tpu.memory_space<vmem>>, %arg7: memref<1xf32, #tpu.memory_space<smem>>, %arg8: memref<1x128xf32, #tpu.memory_space<vmem>>) attributes {dimension_semantics = [#tpu.dimension_semantics<parallel>], iteration_bounds = array<i64: 1>, scalar_prefetch = 0 : i64, scratch_operands = 0 : i64, tpu.core_type = #tpu.core_type<tc>, window_params = [{transform_indices = @transform_0, window_bounds = array<i64: 1, 128>}, {pipeline_mode = #tpu.pipeline_mode<synchronous>, transform_indices = @transform_1, window_bounds = array<i64: 128, 1>}, {pipeline_mode = #tpu.pipeline_mode<synchronous>, transform_indices = @transform_2, window_bounds = array<i64: 128, 1>}, {pipeline_mode = #tpu.pipeline_mode<synchronous>, transform_indices = @transform_3, window_bounds = array<i64: 128, 128>}, {pipeline_mode = #tpu.pipeline_mode<synchronous>, transform_indices = @transform_4, window_bounds = array<i64: 128, 1>}, {pipeline_mode = #tpu.pipeline_mode<synchronous>, transform_indices = @transform_5, window_bounds = array<i64: 128, 1>}, {transform_indices = @transform_6, window_bounds = array<i64: 1>}, {transform_indices = @transform_7, window_bounds = array<i64: 1, 128>}]} {
    %c0 = arith.constant 0 : index
    %c0_0 = arith.constant 0 : index
    %0 = vector.load %arg1[%c0, %c0_0] : memref<1x128xf32, #tpu.memory_space<vmem>>, vector<1x128xf32>
    %c0_1 = arith.constant 0 : index
    %c0_2 = arith.constant 0 : index
    %1 = vector.load %arg2[%c0_1, %c0_2] : memref<128x1xf32, #tpu.memory_space<vmem>>, vector<128x1xf32>
    %2 = vector.broadcast %1 : vector<128x1xf32> to vector<128x128xf32>
    %3 = vector.broadcast %0 : vector<1x128xf32> to vector<128x128xf32>
    %4 = arith.mulf %2, %3 : vector<128x128xf32>
    %c0_3 = arith.constant 0 : index
    %c0_4 = arith.constant 0 : index
    %5 = vector.load %arg3[%c0_3, %c0_4] : memref<128x1xf32, #tpu.memory_space<vmem>>, vector<128x1xf32>
    %6 = vector.broadcast %5 : vector<128x1xf32> to vector<128x128xf32>
    %7 = arith.addf %4, %6 : vector<128x128xf32>
    %cst = arith.constant 0.000000e+00 : f32
    %8 = vector.broadcast %cst : f32 to vector<128x128xf32>
    %9 = arith.maximumf %7, %8 : vector<128x128xf32>
    %c0_5 = arith.constant 0 : index
    %c0_6 = arith.constant 0 : index
    %10 = vector.load %arg4[%c0_5, %c0_6] : memref<128x128xf32, #tpu.memory_space<vmem>>, vector<128x128xf32>
    %cst_7 = arith.constant dense<0.000000e+00> : vector<128x128xf32>
    %11 = tpu.matmul %10, %9, %cst_7 {dimension_numbers = #tpu.dot_dimension_numbers<[1], [0], [0], [1], [0, 0, 1, 1], [], []>} : vector<128x128xf32>, vector<128x128xf32>, vector<128x128xf32> -> vector<128x128xf32>
    %c0_8 = arith.constant 0 : index
    %c0_9 = arith.constant 0 : index
    %12 = vector.load %arg5[%c0_8, %c0_9] : memref<128x1xf32, #tpu.memory_space<vmem>>, vector<128x1xf32>
    %13 = vector.broadcast %12 : vector<128x1xf32> to vector<128x128xf32>
    %14 = arith.addf %11, %13 : vector<128x128xf32>
    %cst_10 = arith.constant 0.000000e+00 : f32
    %15 = vector.broadcast %cst_10 : f32 to vector<128x128xf32>
    %16 = arith.maximumf %14, %15 : vector<128x128xf32>
    %c0_11 = arith.constant 0 : index
    %c0_12 = arith.constant 0 : index
    %17 = vector.load %arg6[%c0_11, %c0_12] : memref<128x1xf32, #tpu.memory_space<vmem>>, vector<128x1xf32>
    %18 = vector.broadcast %17 : vector<128x1xf32> to vector<128x128xf32>
    %19 = arith.mulf %16, %18 : vector<128x128xf32>
    %cst_13 = arith.constant dense<0.000000e+00> : vector<128xf32>
    %20 = vector.multi_reduction <add>, %19, %cst_13 [0] : vector<128x128xf32> to vector<128xf32>
    %21 = vector.shape_cast %20 : vector<128xf32> to vector<1x128xf32>
    %c0_14 = arith.constant 0 : index
    %22 = memref.load %arg7[%c0_14] : memref<1xf32, #tpu.memory_space<smem>>
    %23 = vector.broadcast %22 : f32 to vector<1x128xf32>
    %24 = arith.addf %21, %23 : vector<1x128xf32>
    %c0_15 = arith.constant 0 : index
    %c0_16 = arith.constant 0 : index
    %25 = vector.load %arg8[%c0_15, %c0_16] : memref<1x128xf32, #tpu.memory_space<vmem>>, vector<1x128xf32>
    tpu.vector_store %arg8[%c0_15, %c0_16], %24 {strides = array<i32>} : memref<1x128xf32, #tpu.memory_space<vmem>>, vector<1x128xf32>,
    return
  }
  func.func @transform_0(%arg0: i32) -> (i32, i32) {
    %c0_i32 = arith.constant 0 : i32
    %c0_i32_0 = arith.constant 0 : i32
    return %c0_i32, %arg0 : i32, i32
  }
  func.func @transform_1(%arg0: i32) -> (i32, i32) {
    %c0_i32 = arith.constant 0 : i32
    %c0_i32_0 = arith.constant 0 : i32
    %c0_i32_1 = arith.constant 0 : i32
    return %c0_i32, %c0_i32_0 : i32, i32
  }
  func.func @transform_2(%arg0: i32) -> (i32, i32) {
    %c0_i32 = arith.constant 0 : i32
    %c0_i32_0 = arith.constant 0 : i32
    %c0_i32_1 = arith.constant 0 : i32
    return %c0_i32, %c0_i32_0 : i32, i32
  }
  func.func @transform_3(%arg0: i32) -> (i32, i32) {
    %c0_i32 = arith.constant 0 : i32
    %c0_i32_0 = arith.constant 0 : i32
    %c0_i32_1 = arith.constant 0 : i32
    return %c0_i32, %c0_i32_0 : i32, i32
  }
  func.func @transform_4(%arg0: i32) -> (i32, i32) {
    %c0_i32 = arith.constant 0 : i32
    %c0_i32_0 = arith.constant 0 : i32
    %c0_i32_1 = arith.constant 0 : i32
    return %c0_i32, %c0_i32_0 : i32, i32
  }
  func.func @transform_5(%arg0: i32) -> (i32, i32) {
    %c0_i32 = arith.constant 0 : i32
    %c0_i32_0 = arith.constant 0 : i32
    %c0_i32_1 = arith.constant 0 : i32
    return %c0_i32, %c0_i32_0 : i32, i32
  }
  func.func @transform_6(%arg0: i32) -> i32 {
    %c0_i32 = arith.constant 0 : i32
    %c0_i32_0 = arith.constant 0 : i32
    return %c0_i32 : i32
  }
  func.func @transform_7(%arg0: i32) -> (i32, i32) {
    %c0_i32 = arith.constant 0 : i32
    %c0_i32_0 = arith.constant 0 : i32
    return %c0_i32, %arg0 : i32, i32
  }
}

</mosaic_0001>

<bundles_post_ra>
// kernel: simple_nn_forward.1
= control target key start
LH: loop header
LB: loop body
LE: loop exit
PB: predicated region body
PF: predicated region fallthrough
CT: control target
= control target key end

     0   :  { %v658_v0 = vmov 0   ;;  %s1020_s1 = inlined_call_operand.vmem [shape: f32[128,1], index: 1, kind: input, shape index: {}]   ;;  %s1021_s0 = inlined_call_operand.vmem [shape: f32[1,128], index: 0, kind: input, shape index: {}]   ;;  %s1022_s2 = inlined_call_operand.vmem [shape: f32[128,1], index: 2, kind: input, shape index: {}]   ;;  %s1023_s4 = inlined_call_operand.vmem [shape: f32[128,1], index: 4, kind: input, shape index: {}]   ;;  %s1024_s5 = inlined_call_operand.vmem [shape: f32[128,1], index: 5, kind: input, shape index: {}]   ;;  %s1025_s3 = inlined_call_operand.vmem [shape: f32[128,128], index: 3, kind: input, shape index: {}]   ;;  %s1026_s6 = inlined_call_operand.<no memory space> [shape: f32[1], index: 6, kind: input, shape index: {}]   ;;  %s1027_s7 = inlined_call_operand.vmem [shape: f32[1,128], index: 7, kind: output, shape index: {}]  }
   0x1   :  { %656 = vset.pattern.permute.xlu2 %v658_v0  ;;  %655 = vset.pattern.permute.xlu1 %v658_v0  ;;  %v32_v1 = vld [vmem:[%s1020_s1 + $0x20] sm:$0xff]  ;;  %v30_v2 = vld [vmem:[%s1020_s1 + $0x10] sm:$0xff]  ;;  %v33_v4 = vld [vmem:[%s1020_s1 + $0x28] sm:$0xff] }
   0x2   :  { %v28_v3 = vld [vmem:[%s1020_s1] sm:$0xff]  ;;  %654 = vset.pattern.permute.xlu0 %v658_v0  ;;  %66 = vperm.xlu2 %656, %v32_v1   ;;  %v31_v5 = vld [vmem:[%s1020_s1 + $0x18] sm:$0xff]  ;;  %v29_v6 = vld [vmem:[%s1020_s1 + $0x8] sm:$0xff] }
   0x3   :  { %56 = vperm.xlu1 %655, %v30_v2   ;;  %46 = vperm.xlu0 %654, %v28_v3   ;;  %v36_v7 = vld [vmem:[%s1020_s1 + $0x40] sm:$0xff]  ;;  %v35_v8 = vld [vmem:[%s1020_s1 + $0x38] sm:$0xff]  ;;  %v34_v9 = vld [vmem:[%s1020_s1 + $0x30] sm:$0xff] }
   0x4   :  { %v39_v10 = vld [vmem:[%s1020_s1 + $0x58] sm:$0xff]  ;;  %v38_v11 = vld [vmem:[%s1020_s1 + $0x50] sm:$0xff]  ;;  %v37_v12 = vld [vmem:[%s1020_s1 + $0x48] sm:$0xff] }
   0x5   :  { %v42_v13 = vld [vmem:[%s1020_s1 + $0x70] sm:$0xff]  ;;  %v41_v14 = vld [vmem:[%s1020_s1 + $0x68] sm:$0xff]  ;;  %v40_v15 = vld [vmem:[%s1020_s1 + $0x60] sm:$0xff] }
   0x6   :  { %v144_v16 = vld [vmem:[%s1022_s2 + $0x8] sm:$0xff]  ;;  %v143_v17 = vld [vmem:[%s1022_s2] sm:$0xff]  ;;  %v43_v18 = vld [vmem:[%s1020_s1 + $0x78] sm:$0xff] }
   0x7   :  { %v157_v19 = vld [vmem:[%s1022_s2 + $0x70] sm:$0xff]  ;;  %v158_v20 = vld [vmem:[%s1022_s2 + $0x78] sm:$0xff]  ;;  %v155_v23 = vld [vmem:[%s1022_s2 + $0x60] sm:$0xff] }
   0x8   :  { %v145_v21 = vld [vmem:[%s1022_s2 + $0x10] sm:$0xff]  ;;  %v154_v22 = vld [vmem:[%s1022_s2 + $0x58] sm:$0xff]  ;;  %v156_v24 = vld [vmem:[%s1022_s2 + $0x68] sm:$0xff] }
   0x9   :  { %v151_v25 = vld [vmem:[%s1022_s2 + $0x40] sm:$0xff]  ;;  %v152_v26 = vld [vmem:[%s1022_s2 + $0x48] sm:$0xff]  ;;  %v153_v27 = vld [vmem:[%s1022_s2 + $0x50] sm:$0xff] }
   0xa   :  { %71 = vperm.xlu2 %656, %v33_v4   ;;  %v148_v28 = vld [vmem:[%s1022_s2 + $0x28] sm:$0xff]  ;;  %v149_v29 = vld [vmem:[%s1022_s2 + $0x30] sm:$0xff]  ;;  %v150_v30 = vld [vmem:[%s1022_s2 + $0x38] sm:$0xff] }
   0xb   :  { %61 = vperm.xlu1 %655, %v31_v5   ;;  %51 = vperm.xlu0 %654, %v29_v6   ;;  %v287_v31 = vld [vmem:[%s1023_s4] sm:$0xff]  ;;  %v146_v32 = vld [vmem:[%s1022_s2 + $0x18] sm:$0xff]  ;;  %v289_v35 = vld [vmem:[%s1023_s4 + $0x10] sm:$0xff] }
   0xc   :  { %v147_v33 = vld [vmem:[%s1022_s2 + $0x20] sm:$0xff]  ;;  %v290_v34 = vld [vmem:[%s1023_s4 + $0x18] sm:$0xff]  ;;  %v288_v36 = vld [vmem:[%s1023_s4 + $0x8] sm:$0xff] }
   0xd   :  { %v810_v37 = vld [vmem:[%s1021_s0] ss:$0 sm:$0xff]  ;;  %v293_v40 = vld [vmem:[%s1023_s4 + $0x30] sm:$0xff]  ;;  %v292_v41 = vld [vmem:[%s1023_s4 + $0x28] sm:$0xff] }
   0xe   :  { %v291_v42 = vld [vmem:[%s1023_s4 + $0x20] sm:$0xff]  ;;  %v296_v45 = vld [vmem:[%s1023_s4 + $0x48] sm:$0xff]  ;;  %v294_v47 = vld [vmem:[%s1023_s4 + $0x38] sm:$0xff] }
   0xf   :  { %v295_v46 = vld [vmem:[%s1023_s4 + $0x40] sm:$0xff]  ;;  %v298_v49 = vld [vmem:[%s1023_s4 + $0x58] sm:$0xff]  ;;  %v297_v50 = vld [vmem:[%s1023_s4 + $0x50] sm:$0xff] }
  0x10   :  { %v299_v48 = vld [vmem:[%s1023_s4 + $0x60] sm:$0xff]  ;;  %v302_v56 = vld [vmem:[%s1023_s4 + $0x78] sm:$0xff]  ;;  %v301_v57 = vld [vmem:[%s1023_s4 + $0x70] sm:$0xff] }
  0x11   :  { %v300_v58 = vld [vmem:[%s1023_s4 + $0x68] sm:$0xff]  ;;  %v466_v63 = vld [vmem:[%s1024_s5 + $0x10] sm:$0xff]  ;;  %v464_v2 = vld [vmem:[%s1024_s5] sm:$0xff] }
  0x12   :  { %86 = vperm.xlu2 %656, %v36_v7   ;;  %v465_v1 = vld [vmem:[%s1024_s5 + $0x8] sm:$0xff]  ;;  %v468_v6 = vld [vmem:[%s1024_s5 + $0x20] sm:$0xff]  ;;  %v467_v7 = vld [vmem:[%s1024_s5 + $0x18] sm:$0xff] }
  0x13   :  { %81 = vperm.xlu1 %655, %v35_v8   ;;  %76 = vperm.xlu0 %654, %v34_v9   ;;  %v469_v5 = vld [vmem:[%s1024_s5 + $0x28] sm:$0xff] }
  0x1a   :  { %101 = vperm.xlu2 %656, %v39_v10  }
  0x1b   :  { %96 = vperm.xlu1 %655, %v38_v11   ;;  %91 = vperm.xlu0 %654, %v37_v12   ;;  %v472_v11 = vld [vmem:[%s1024_s5 + $0x40] sm:$0xff]  ;;  %v471_v12 = vld [vmem:[%s1024_s5 + $0x38] sm:$0xff] }
  0x22   :  { %116 = vperm.xlu2 %656, %v42_v13   ;;  %v470_v13 = vld [vmem:[%s1024_s5 + $0x30] sm:$0xff] }
  0x23   :  { %111 = vperm.xlu1 %655, %v41_v14   ;;  %106 = vperm.xlu0 %654, %v40_v15  }
  0x2a   :  { %166 = vperm.xlu2 %656, %v144_v16  }
  0x2b   :  { %161 = vperm.xlu1 %655, %v143_v17   ;;  %121 = vperm.xlu0 %654, %v43_v18   ;;  %v475_v17 = vld [vmem:[%s1024_s5 + $0x58] sm:$0xff]  ;;  %v474_v18 = vld [vmem:[%s1024_s5 + $0x50] sm:$0xff] }
  0x32   :  { %231 = vperm.xlu2 %656, %v157_v19   ;;  %v473_v19 = vld [vmem:[%s1024_s5 + $0x48] sm:$0xff] }
  0x33   :  { %236 = vperm.xlu1 %655, %v158_v20   ;;  %171 = vperm.xlu0 %654, %v145_v21  }
  0x3a   :  { %216 = vperm.xlu2 %656, %v154_v22  }
  0x3b   :  { %221 = vperm.xlu1 %655, %v155_v23   ;;  %226 = vperm.xlu0 %654, %v156_v24   ;;  %v478_v23 = vld [vmem:[%s1024_s5 + $0x70] sm:$0xff]  ;;  %v477_v24 = vld [vmem:[%s1024_s5 + $0x68] sm:$0xff] }
  0x42   :  { %201 = vperm.xlu2 %656, %v151_v25   ;;  %v476_v25 = vld [vmem:[%s1024_s5 + $0x60] sm:$0xff] }
  0x43   :  { %206 = vperm.xlu1 %655, %v152_v26   ;;  %211 = vperm.xlu0 %654, %v153_v27  }
  0x4a   :  { %186 = vperm.xlu2 %656, %v148_v28  }
  0x4b   :  { %191 = vperm.xlu1 %655, %v149_v29   ;;  %196 = vperm.xlu0 %654, %v150_v30  }
  0x52   :  { %305 = vperm.xlu2 %656, %v287_v31  }
  0x53   :  { %176 = vperm.xlu1 %655, %v146_v32   ;;  %181 = vperm.xlu0 %654, %v147_v33  }
  0x5a   :  { %320 = vperm.xlu2 %656, %v290_v34   ;;  %v479_v34 = vld [vmem:[%s1024_s5 + $0x78] sm:$0xff] }
  0x5b   :  { %315 = vperm.xlu1 %655, %v289_v35   ;;  %310 = vperm.xlu0 %654, %v288_v36  }
  0x5c   :  { %v67_v38 = vpop.permute.xlu2 %66 }
  0x5d   :  { %v813_v39 = vmul.f32 %v810_v37, %v67_v38 }
  0x62   :  { %335 = vperm.xlu2 %656, %v293_v40  }
  0x63   :  { %330 = vperm.xlu1 %655, %v292_v41   ;;  %325 = vperm.xlu0 %654, %v291_v42  }
  0x64   :  { %v72_v43 = vpop.permute.xlu2 %71 }
  0x65   :  { %v825_v44 = vmul.f32 %v810_v37, %v72_v43 }
  0x6a   :  { %350 = vperm.xlu2 %656, %v296_v45  }
  0x6b   :  { %345 = vperm.xlu1 %655, %v295_v46   ;;  %340 = vperm.xlu0 %654, %v294_v47  }
  0x6c   :  { %v845_v53 = vpop.permute.xlu2 %86 }
  0x72   :  { %365 = vperm.xlu2 %656, %v299_v48  }
  0x73   :  { %360 = vperm.xlu1 %655, %v298_v49   ;;  %355 = vperm.xlu0 %654, %v297_v50  }
  0x74   :  { %v871_v0 = vpop.permute.xlu2 %101 }
  0x75   :  { %v57_v51 = vpop.permute.xlu1 %56  ;;  %v47_v52 = vpop.permute.xlu0 %46  ;;  %v138_v42 = vmul.f32 %v810_v37, %v871_v0 }
  0x76   :  { %v848_v54 = vmul.f32 %v810_v37, %v57_v51  ;;  %v851_v55 = vmul.f32 %v810_v37, %v47_v52 }
  0x7a   :  { %380 = vperm.xlu2 %656, %v302_v56  }
  0x7b   :  { %375 = vperm.xlu1 %655, %v301_v57   ;;  %370 = vperm.xlu0 %654, %v300_v58   ;;  %v135_v58 = vmul.f32 %v810_v37, %v845_v53 }
  0x7c   :  { %v117_v8 = vpop.permute.xlu2 %116 }
  0x7d   :  { %v62_v59 = vpop.permute.xlu1 %61  ;;  %v52_v60 = vpop.permute.xlu0 %51  ;;  %v141_v26 = vmul.f32 %v810_v37, %v117_v8 }
  0x7e   :  { %v863_v61 = vmul.f32 %v810_v37, %v62_v59  ;;  %v866_v62 = vmul.f32 %v810_v37, %v52_v60 }
  0x82   :  { %492 = vperm.xlu2 %656, %v466_v63  }
  0x83   :  { %487 = vperm.xlu1 %655, %v465_v1   ;;  %482 = vperm.xlu0 %654, %v464_v2  }
  0x84   :  { %v901_v14 = vpop.permute.xlu2 %166 }
  0x85   :  { %v879_v3 = vpop.permute.xlu1 %81  ;;  %v881_v4 = vpop.permute.xlu0 %76 }
  0x86   :  { %v134_v2 = vmul.f32 %v810_v37, %v879_v3 }
  0x8a   :  { %507 = vperm.xlu2 %656, %v469_v5   ;;  %v133_v5 = vmul.f32 %v810_v37, %v881_v4 }
  0x8b   :  { %502 = vperm.xlu1 %655, %v468_v6   ;;  %497 = vperm.xlu0 %654, %v467_v7  }
  0x8c   :  { %v232_v22 = vpop.permute.xlu2 %231 }
  0x8d   :  { %v97_v9 = vpop.permute.xlu1 %96  ;;  %v92_v10 = vpop.permute.xlu0 %91  ;;  %v253_v30 = vadd.f32 %v232_v22, %v141_v26  ;;  %v272_v22 = vld [vmem:[%s1025_s3 + $0x8] sm:$0xff]  ;;  %v273_v26 = vld [vmem:[%s1025_s3 + $0x10] sm:$0xff] }
  0x8e   :  { %v137_v50 = vmul.f32 %v810_v37, %v97_v9  ;;  %v136_v51 = vmul.f32 %v810_v37, %v92_v10 }
  0x8f   :  { %v269_v35 = vmax.f32 %v253_v30, 0.0  ;;  %v274_v30 = vld [vmem:[%s1025_s3 + $0x18] sm:$0xff] }
  0x92   :  { %522 = vperm.xlu2 %656, %v472_v11  }
  0x93   :  { %517 = vperm.xlu1 %655, %v471_v12   ;;  %512 = vperm.xlu0 %654, %v470_v13  }
  0x94   :  { %v217_v32 = vpop.permute.xlu2 %216 }
  0x95   :  { %v112_v15 = vpop.permute.xlu1 %111  ;;  %v107_v16 = vpop.permute.xlu0 %106  ;;  %v250_v46 = vadd.f32 %v217_v32, %v138_v42  ;;  %v282_v32 = vld [vmem:[%s1025_s3 + $0x58] sm:$0xff] }
  0x96   :  { %v140_v36 = vmul.f32 %v810_v37, %v112_v15  ;;  %v139_v38 = vmul.f32 %v810_v37, %v107_v16 }
  0x97   :  { %v266_v52 = vmax.f32 %v250_v46, 0.0 }
  0x9a   :  { %537 = vperm.xlu2 %656, %v475_v17  }
  0x9b   :  { %532 = vperm.xlu1 %655, %v474_v18   ;;  %527 = vperm.xlu0 %654, %v473_v19   ;;  %v240_v18 = vadd.f32 %v901_v14, %v866_v62  ;;  %v271_v62 = vld [vmem:[%s1025_s3] sm:$0xff] }
  0x9c   :  { %v202_v48 = vpop.permute.xlu2 %201  ;;  %v279_v14 = vld [vmem:[%s1025_s3 + $0x40] sm:$0xff] }
  0x9d   :  { %v912_v20 = vpop.permute.xlu1 %161  ;;  %v122_v21 = vpop.permute.xlu0 %121  ;;  %v247_v63 = vadd.f32 %v202_v48, %v135_v58 }
  0x9e   :  { %v142_v27 = vmul.f32 %v810_v37, %v122_v21  ;;  %v256_v21 = vmax.f32 %v240_v18, 0.0 }
  0x9f   :  { %v263_v53 = vmax.f32 %v247_v63, 0.0 }
  0xa2   :  { %552 = vperm.xlu2 %656, %v478_v23   ;;  %v276_v23 = vld [vmem:[%s1025_s3 + $0x28] sm:$0xff] }
  0xa3   :  { %547 = vperm.xlu1 %655, %v477_v24   ;;  %542 = vperm.xlu0 %654, %v476_v25   ;;  %v280_v24 = vld [vmem:[%s1025_s3 + $0x48] sm:$0xff] }
  0xa4   :  { %v187_v6 = vpop.permute.xlu2 %186  ;;  %v284_v25 = vld [vmem:[%s1025_s3 + $0x68] sm:$0xff] }
  0xa5   :  { %v237_v28 = vpop.permute.xlu1 %236  ;;  %v925_v29 = vpop.permute.xlu0 %171  ;;  %v244_v11 = vadd.f32 %v187_v6, %v825_v44 }
  0xa6   :  { %v254_v31 = vadd.f32 %v237_v28, %v142_v27  ;;  %v241_v44 = vadd.f32 %v925_v29, %v848_v54  ;;  %v277_v27 = vld [vmem:[%s1025_s3 + $0x30] sm:$0xff] }
  0xa7   :  { %v260_v37 = vmax.f32 %v244_v11, 0.0  ;;  %v281_v28 = vld [vmem:[%s1025_s3 + $0x50] sm:$0xff] }
  0xa8   :  { %v270_v33 = vmax.f32 %v254_v31, 0.0  ;;  %v285_v29 = vld [vmem:[%s1025_s3 + $0x70] sm:$0xff]  ;;  %v278_v31 = vld [vmem:[%s1025_s3 + $0x38] sm:$0xff] }
  0xaa   :  { %383 = vmatpush.msra.mxu0 %v270_v33  ;;  %605 = vmatpush.msra.mxu1 %v270_v33 }
  0xab   :  { %606 = vmatpush.msra.mxu2 %v270_v33  ;;  %607 = vmatpush.msra.mxu3 %v270_v33  ;;  %v286_v33 = vld [vmem:[%s1025_s3 + $0x78] sm:$0xff] }
  0xac   :  { %557 = vperm.xlu0 %654, %v479_v34   ;;  %384 = vmatpush.msra.mxu0 %v269_v35  ;;  %v306_v34 = vpop.permute.xlu2 %305 }
  0xad   :  { %608 = vmatpush.msra.mxu1 %v269_v35  ;;  %609 = vmatpush.msra.mxu2 %v269_v35  ;;  %v222_v40 = vpop.permute.xlu1 %221  ;;  %v227_v41 = vpop.permute.xlu0 %226 }
  0xae   :  { %610 = vmatpush.msra.mxu3 %v269_v35  ;;  %v251_v43 = vadd.f32 %v222_v40, %v139_v38  ;;  %v252_v45 = vadd.f32 %v227_v41, %v140_v36 }
  0xb0   :  { %v268_v47 = vmax.f32 %v252_v45, 0.0  ;;  %v267_v49 = vmax.f32 %v251_v43, 0.0 }
  0xb2   :  { %385 = vmatpush.msra.mxu0 %v268_v47  ;;  %611 = vmatpush.msra.mxu1 %v268_v47 }
  0xb3   :  { %612 = vmatpush.msra.mxu2 %v268_v47  ;;  %613 = vmatpush.msra.mxu3 %v268_v47 }
  0xb4   :  { %386 = vmatpush.msra.mxu0 %v267_v49  ;;  %614 = vmatpush.msra.mxu1 %v267_v49  ;;  %v321_v38 = vpop.permute.xlu2 %320 }
  0xb5   :  { %615 = vmatpush.msra.mxu2 %v267_v49  ;;  %616 = vmatpush.msra.mxu3 %v267_v49  ;;  %v207_v56 = vpop.permute.xlu1 %206  ;;  %v212_v57 = vpop.permute.xlu0 %211 }
  0xb6   :  { %v248_v59 = vadd.f32 %v207_v56, %v136_v51  ;;  %v249_v60 = vadd.f32 %v212_v57, %v137_v50  ;;  %387 = vmatpush.msra.mxu0 %v266_v52  ;;  %617 = vmatpush.msra.mxu1 %v266_v52 }
  0xb7   :  { %618 = vmatpush.msra.mxu2 %v266_v52  ;;  %619 = vmatpush.msra.mxu3 %v266_v52 }
  0xb8   :  { %v265_v0 = vmax.f32 %v249_v60, 0.0  ;;  %v264_v1 = vmax.f32 %v248_v59, 0.0 }
  0xba   :  { %388 = vmatpush.msra.mxu0 %v265_v0  ;;  %620 = vmatpush.msra.mxu1 %v265_v0 }
  0xbb   :  { %621 = vmatpush.msra.mxu2 %v265_v0  ;;  %622 = vmatpush.msra.mxu3 %v265_v0 }
  0xbc   :  { %389 = vmatpush.msra.mxu0 %v264_v1  ;;  %623 = vmatpush.msra.mxu1 %v264_v1  ;;  %v336_v42 = vpop.permute.xlu2 %335 }
  0xbd   :  { %624 = vmatpush.msra.mxu2 %v264_v1  ;;  %625 = vmatpush.msra.mxu3 %v264_v1  ;;  %v192_v7 = vpop.permute.xlu1 %191  ;;  %v197_v8 = vpop.permute.xlu0 %196 }
  0xbe   :  { %v245_v9 = vadd.f32 %v192_v7, %v133_v5  ;;  %v246_v10 = vadd.f32 %v197_v8, %v134_v2  ;;  %390 = vmatpush.msra.mxu0 %v263_v53  ;;  %626 = vmatpush.msra.mxu1 %v263_v53 }
  0xbf   :  { %627 = vmatpush.msra.mxu2 %v263_v53  ;;  %628 = vmatpush.msra.mxu3 %v263_v53 }
  0xc0   :  { %v262_v3 = vmax.f32 %v246_v10, 0.0  ;;  %v261_v12 = vmax.f32 %v245_v9, 0.0 }
  0xc2   :  { %391 = vmatpush.msra.mxu0 %v262_v3  ;;  %629 = vmatpush.msra.mxu1 %v262_v3 }
  0xc3   :  { %630 = vmatpush.msra.mxu2 %v262_v3  ;;  %631 = vmatpush.msra.mxu3 %v262_v3 }
  0xc4   :  { %392 = vmatpush.msra.mxu0 %v261_v12  ;;  %632 = vmatpush.msra.mxu1 %v261_v12  ;;  %v351_v46 = vpop.permute.xlu2 %350 }
  0xc5   :  { %633 = vmatpush.msra.mxu2 %v261_v12  ;;  %634 = vmatpush.msra.mxu3 %v261_v12  ;;  %v177_v4 = vpop.permute.xlu1 %176  ;;  %v182_v13 = vpop.permute.xlu0 %181 }
  0xc6   :  { %v242_v15 = vadd.f32 %v177_v4, %v863_v61  ;;  %v243_v16 = vadd.f32 %v182_v13, %v813_v39  ;;  %393 = vmatpush.msra.mxu0 %v260_v37  ;;  %635 = vmatpush.msra.mxu1 %v260_v37  ;;  %v239_v61 = vadd.f32 %v912_v20, %v851_v55  ;;  %v257_v39 = vmax.f32 %v241_v44, 0.0  ;;  %v275_v55 = vld [vmem:[%s1025_s3 + $0x20] sm:$0xff] }
  0xc7   :  { %636 = vmatpush.msra.mxu2 %v260_v37  ;;  %637 = vmatpush.msra.mxu3 %v260_v37  ;;  %v283_v20 = vld [vmem:[%s1025_s3 + $0x60] sm:$0xff] }
  0xc8   :  { %v259_v17 = vmax.f32 %v243_v16, 0.0  ;;  %v258_v19 = vmax.f32 %v242_v15, 0.0  ;;  %v255_v54 = vmax.f32 %v239_v61, 0.0 }
  0xca   :  { %394 = vmatpush.msra.mxu0 %v259_v17  ;;  %638 = vmatpush.msra.mxu1 %v259_v17 }
  0xcb   :  { %639 = vmatpush.msra.mxu2 %v259_v17  ;;  %640 = vmatpush.msra.mxu3 %v259_v17 }
  0xcc   :  { %395 = vmatpush.msra.mxu0 %v258_v19  ;;  %641 = vmatpush.msra.mxu1 %v258_v19  ;;  %v1001_v49 = vpop.permute.xlu2 %365 }
  0xcd   :  { %642 = vmatpush.msra.mxu2 %v258_v19  ;;  %643 = vmatpush.msra.mxu3 %v258_v19  ;;  %v311_v35 = vpop.permute.xlu0 %310  ;;  %v316_v36 = vpop.permute.xlu1 %315 }
  0xce   :  { %396 = vmatpush.msra.mxu0 %v257_v39  ;;  %644 = vmatpush.msra.mxu1 %v257_v39 }
  0xcf   :  { %645 = vmatpush.msra.mxu2 %v257_v39  ;;  %646 = vmatpush.msra.mxu3 %v257_v39 }
  0xd0   :  { %397 = vmatpush.msra.mxu0 %v256_v21  ;;  %647 = vmatpush.msra.mxu1 %v256_v21 }
  0xd1   :  { %648 = vmatpush.msra.mxu2 %v256_v21  ;;  %649 = vmatpush.msra.mxu3 %v256_v21 }
  0xd2   :  { %398 = vmatpush.msra.mxu0 %v255_v54  ;;  %650 = vmatpush.msra.mxu1 %v255_v54 }
  0xd3   :  { %651 = vmatpush.msra.mxu2 %v255_v54  ;;  %652 = vmatpush.msra.mxu3 %v255_v54 }
  0xd4   :  { %399 = vmatmul.f32.vlgmr.msra.gmra.mxu0 %v271_v62  ;;  %411 = vmatmul.f32.vlgmr.msra.gmra.mxu1 %v275_v55  ;;  %v1007_v52 = vpop.permute.xlu2 %380 }
  0xd5   :  { %423 = vmatmul.f32.vlgmr.msra.gmra.mxu2 %v279_v14  ;;  %435 = vmatmul.f32.vlgmr.msra.gmra.mxu3 %v283_v20  ;;  %v326_v40 = vpop.permute.xlu0 %325  ;;  %v331_v41 = vpop.permute.xlu1 %330 }
  0xdc   :  { %402 = vmatmul.f32.gmra.mxu0 %v272_v22  ;;  %414 = vmatmul.f32.gmra.mxu1 %v276_v23  ;;  %v493_v1 = vpop.permute.xlu2 %492 }
  0xdd   :  { %426 = vmatmul.f32.gmra.mxu2 %v280_v24  ;;  %438 = vmatmul.f32.gmra.mxu3 %v284_v25  ;;  %v341_v43 = vpop.permute.xlu0 %340  ;;  %v346_v45 = vpop.permute.xlu1 %345 }
  0xe4   :  { %405 = vmatmul.f32.gmra.mxu0 %v273_v26  ;;  %417 = vmatmul.f32.gmra.mxu1 %v277_v27  ;;  %v508_v12 = vpop.permute.xlu2 %507 }
  0xe5   :  { %429 = vmatmul.f32.gmra.mxu2 %v281_v28  ;;  %441 = vmatmul.f32.gmra.mxu3 %v285_v29  ;;  %v356_v47 = vpop.permute.xlu0 %355  ;;  %v999_v48 = vpop.permute.xlu1 %360 }
  0xec   :  { %408 = vmatmul.f32.gmra.mxu0 %v274_v30  ;;  %420 = vmatmul.f32.gmra.mxu1 %v278_v31  ;;  %v523_v27 = vpop.permute.xlu2 %522 }
  0xed   :  { %432 = vmatmul.f32.gmra.mxu2 %v282_v32  ;;  %444 = vmatmul.f32.gmra.mxu3 %v286_v33  ;;  %v1003_v50 = vpop.permute.xlu0 %370  ;;  %v1005_v51 = vpop.permute.xlu1 %375 }
  0xf5   :  { %v483_v58 = vpop.permute.xlu0 %482  ;;  %v488_v59 = vpop.permute.xlu1 %487 }
  0xfd   :  { %v498_v2 = vpop.permute.xlu0 %497  ;;  %v503_v11 = vpop.permute.xlu1 %502 }
 0x105   :  { %v513_v13 = vpop.permute.xlu0 %512  ;;  %v518_v22 = vpop.permute.xlu1 %517 }
 0x10d   :  { %v528_v32 = vpop.permute.xlu0 %527 }
 0x151   :  { %v400_v56 = vpop.f32.mrf.mxu0  ;;  %v412_v57 = vpop.f32.mrf.mxu1 }
 0x152   :  { %v401_v9 = vadd.f32 %v400_v56, %v306_v34  ;;  %v413_v16 = vadd.f32 %v412_v57, %v326_v40 }
 0x154   :  { %v448_v37 = vmax.f32 %v401_v9, 0.0  ;;  %v452_v62 = vmax.f32 %v413_v16, 0.0  ;;  %v543_v9 = vpop.permute.xlu0 %542 }
 0x156   :  { %v560_v19 = vmul.f32 %v483_v58, %v448_v37  ;;  %v564_v28 = vmul.f32 %v503_v11, %v452_v62 }
 0x158   :  { %v424_v60 = vpop.f32.mrf.mxu2  ;;  %v436_v5 = vpop.f32.mrf.mxu3 }
 0x159   :  { %v403_v63 = vpop.f32.mrf.mxu0  ;;  %v415_v0 = vpop.f32.mrf.mxu1  ;;  %v425_v29 = vadd.f32 %v424_v60, %v346_v45  ;;  %v437_v60 = vadd.f32 %v436_v5, %v1001_v49 }
 0x15a   :  { %v404_v53 = vadd.f32 %v403_v63, %v311_v35  ;;  %v416_v61 = vadd.f32 %v415_v0, %v331_v41  ;;  %v533_v0 = vpop.permute.xlu1 %532 }
 0x15b   :  { %v456_v41 = vmax.f32 %v425_v29, 0.0 }
 0x15c   :  { %v449_v3 = vmax.f32 %v404_v53, 0.0  ;;  %v453_v23 = vmax.f32 %v416_v61, 0.0  ;;  %v538_v53 = vpop.permute.xlu2 %537 }
 0x15d   :  { %v568_v45 = vmul.f32 %v523_v27, %v456_v41 }
 0x15e   :  { %v561_v44 = vmul.f32 %v488_v59, %v449_v3  ;;  %v565_v34 = vmul.f32 %v508_v12, %v453_v23 }
 0x160   :  { %v427_v6 = vpop.f32.mrf.mxu2  ;;  %v439_v15 = vpop.f32.mrf.mxu3  ;;  %v576_v55 = vadd.f32 %v561_v44, %v560_v19 }
 0x161   :  { %v406_v7 = vpop.f32.mrf.mxu0  ;;  %v418_v8 = vpop.f32.mrf.mxu1  ;;  %v428_v35 = vadd.f32 %v427_v6, %v351_v46  ;;  %v440_v6 = vadd.f32 %v439_v15, %v1003_v50 }
 0x162   :  { %v407_v10 = vadd.f32 %v406_v7, %v316_v36  ;;  %v419_v14 = vadd.f32 %v418_v8, %v336_v42  ;;  %v548_v44 = vpop.permute.xlu1 %547 }
 0x163   :  { %v457_v58 = vmax.f32 %v428_v35, 0.0 }
 0x164   :  { %v450_v4 = vmax.f32 %v407_v10, 0.0  ;;  %v454_v30 = vmax.f32 %v419_v14, 0.0  ;;  %v460_v10 = vmax.f32 %v437_v60, 0.0 }
 0x165   :  { %v569_v46 = vmul.f32 %v528_v32, %v457_v58 }
 0x166   :  { %v562_v39 = vmul.f32 %v493_v1, %v450_v4  ;;  %v566_v42 = vmul.f32 %v513_v13, %v454_v30  ;;  %v572_v5 = vmul.f32 %v543_v9, %v460_v10 }
 0x168   :  { %v430_v17 = vpop.f32.mrf.mxu2  ;;  %v577_v24 = vadd.f32 %v576_v55, %v562_v39  ;;  %v442_v33 = vpop.f32.mrf.mxu3 }
 0x169   :  { %v409_v18 = vpop.f32.mrf.mxu0  ;;  %v421_v54 = vpop.f32.mrf.mxu1  ;;  %v431_v56 = vadd.f32 %v430_v17, %v356_v47  ;;  %v443_v3 = vadd.f32 %v442_v33, %v1005_v51 }
 0x16a   :  { %v410_v21 = vadd.f32 %v409_v18, %v321_v38  ;;  %v422_v26 = vadd.f32 %v421_v54, %v341_v43  ;;  %v553_v18 = vpop.permute.xlu2 %552  ;;  %v558_v39 = vpop.permute.xlu0 %557 }
 0x16b   :  { %v458_v1 = vmax.f32 %v431_v56, 0.0  ;;  %v462_v13 = vmax.f32 %v443_v3, 0.0 }
 0x16c   :  { %v451_v20 = vmax.f32 %v410_v21, 0.0  ;;  %v455_v38 = vmax.f32 %v422_v26, 0.0 }
 0x16d   :  { %v570_v11 = vmul.f32 %v533_v0, %v458_v1  ;;  %v574_v19 = vmul.f32 %v553_v18, %v462_v13 }
 0x16e   :  { %v563_v25 = vmul.f32 %v498_v2, %v451_v20  ;;  %v567_v59 = vmul.f32 %v518_v22, %v455_v38 }
 0x170   :  { %v578_v31 = vadd.f32 %v577_v24, %v563_v25  ;;  %v433_v40 = vpop.f32.mrf.mxu2  ;;  %v445_v47 = vpop.f32.mrf.mxu3 }
 0x171   :  { %v434_v43 = vadd.f32 %v433_v40, %v999_v48  ;;  %v461_v48 = vmax.f32 %v440_v6, 0.0  ;;  %v446_v49 = vadd.f32 %v445_v47, %v1007_v52  ;;  %v598_v52 = vstv %s1026_s6 }
 0x172   :  { %v579_v36 = vadd.f32 %v578_v31, %v564_v28 }
 0x173   :  { %v459_v8 = vmax.f32 %v434_v43, 0.0  ;;  %v573_v17 = vmul.f32 %v548_v44, %v461_v48  ;;  %v463_v15 = vmax.f32 %v446_v49, 0.0 }
 0x174   :  { %v580_v57 = vadd.f32 %v579_v36, %v565_v34 }
 0x175   :  { %v571_v37 = vmul.f32 %v538_v53, %v459_v8  ;;  %v575_v21 = vmul.f32 %v558_v39, %v463_v15 }
 0x176   :  { %v581_v63 = vadd.f32 %v580_v57, %v566_v42 }
 0x178   :  { %v582_v2 = vadd.f32 %v581_v63, %v567_v59 }
 0x17a   :  { %v583_v7 = vadd.f32 %v582_v2, %v568_v45 }
 0x17c   :  { %v584_v12 = vadd.f32 %v583_v7, %v569_v46 }
 0x17e   :  { %v585_v4 = vadd.f32 %v584_v12, %v570_v11 }
 0x180   :  { %v586_v16 = vadd.f32 %v585_v4, %v571_v37 }
 0x182   :  { %v587_v50 = vadd.f32 %v586_v16, %v572_v5 }
 0x184   :  { %v588_v61 = vadd.f32 %v587_v50, %v573_v17 }
 0x186   :  { %v589_v54 = vadd.f32 %v588_v61, %v574_v19 }
 0x188   :  { %v590_v51 = vadd.f32 %v589_v54, %v575_v21 }
 0x18a   :  { %v591_v62 = vrot.slane %v590_v51, 4 }
 0x18c   :  { %v592_v55 = vadd.f32 %v591_v62, %v590_v51 }
 0x18e   :  { %v593_v14 = vrot.slane %v592_v55, 2 }
 0x190   :  { %v594_v20 = vadd.f32 %v593_v14, %v592_v55 }
 0x192   :  { %v595_v22 = vrot.slane %v594_v20, 1 }
 0x194   :  { %v596_v23 = vadd.f32 %v595_v22, %v594_v20 }
 0x196   :  { %v599_v24 = vadd.f32 %v598_v52, %v596_v23 }
 0x198   :  { %600 = vst [vmem:[%s1027_s7] sm:$0x1] %v599_v24 }

</bundles_post_ra>
